<compile_context>
chip_gen: v7x
topology: tpu7x:2x2x1
jax: 0.10.0
libtpu: 0.0.40
codegen_flags: <defaults>
</compile_context>

<pallas_src>
import functools

import jax
import jax.numpy as jnp
from jax import lax
from jax.experimental import pallas as pl
from jax.experimental.pallas import tpu as pltpu

IN_F = 4      # Flatten(2x2) -> 4 input features
HID_F = 5     # FFNet arch = (4, 5, 4)
OUT_F = 4

LANES = 128            # batch elements per lane group
CHUNK_SUBLANES = 8     # inner-loop chunk: one full (8,128) vreg slab per row
MAX_SB_TILE = 256      # sublane groups per grid step (256*128 = 32768 batch,
                       # ~1 MiB in+out per step, ~2 MiB double-buffered)


def ffnet_kernel(w1_ref, b1_ref, w2_ref, b2_ref, x_ref, o_ref):
    """One batch tile of Linear(4,5) -> ReLU -> Linear(5,4), pure VPU.

    x_ref : [IN_F,  SB, 128] VMEM — feature-major, batch on (sublane, lane).
    o_ref : [OUT_F, SB, 128] VMEM — same layout (lane- and sublane-dense stores).
    w1_ref: [IN_F, HID_F]  SMEM scalar table ([in, out] layout).
    b1_ref: [HID_F]        SMEM.
    w2_ref: [HID_F, OUT_F] SMEM.
    b2_ref: [OUT_F]        SMEM.
    """
    sb = x_ref.shape[1]
    n_chunks = sb // CHUNK_SUBLANES

    # Hoist all 49 scalar weight/bias reads out of the chunk loop (no per-chunk
    # SMEM loads competing for the scalar slots).
    w1 = [[w1_ref[i, j] for j in range(HID_F)] for i in range(IN_F)]
    b1 = [b1_ref[j] for j in range(HID_F)]
    w2 = [[w2_ref[j, k] for k in range(OUT_F)] for j in range(HID_F)]
    b2 = [b2_ref[k] for k in range(OUT_F)]

    def chunk_body(c, carry):
        s = pl.multiple_of(c * CHUNK_SUBLANES, CHUNK_SUBLANES)
        # 4 input rows, each a full (8,128) slab -> ~13 live vregs per chunk.
        xs = [x_ref[i, pl.ds(s, CHUNK_SUBLANES), :] for i in range(IN_F)]

        # Hidden layer: h_j = relu(b1[j] + sum_i w1[i,j] * x_i)
        hs = []
        for j in range(HID_F):
            acc = xs[0] * w1[0][j]
            for i in range(1, IN_F):
                acc = acc + xs[i] * w1[i][j]
            hs.append(jnp.maximum(acc + b1[j], 0.0))

        # Output layer: o_k = b2[k] + sum_j w2[j,k] * h_j
        for k in range(OUT_F):
            acc = hs[0] * w2[0][k]
            for j in range(1, HID_F):
                acc = acc + hs[j] * w2[j][k]
            o_ref[k, pl.ds(s, CHUNK_SUBLANES), :] = acc + b2[k]
        return carry

    lax.fori_loop(0, n_chunks, chunk_body, 0, unroll=True)


@functools.partial(jax.jit, static_argnames=("max_sb_tile",))
def model1_forward(x, w1, b1, w2, b2, max_sb_tile=MAX_SB_TILE):
    """x: [B, 2, 2] float32 -> [B, 2, 2] float32 (matches Model1.forward)."""
    B = x.shape[0]

    # nn.Flatten(), then relayout so the batch rides (sublane, lane).
    # Transpose + (tiny) pad fuse into a single XLA copy pass; the reshape to
    # the 3-D lane-major view is metadata-only.
    xt = x.reshape(B, IN_F).T                                   # [4, B]
    Bp = ((B + LANES - 1) // LANES) * LANES                      # pad to 128 only
    if Bp != B:
        xt = jnp.pad(xt, ((0, 0), (0, Bp - B)))
    G = Bp // LANES
    x3 = xt.reshape(IN_F, G, LANES)                              # [4, G, 128]

    # Tile the sublane-group axis; partial tail tile handled by Pallas masking.
    sb_tile = min(max_sb_tile,
                  ((G + CHUNK_SUBLANES - 1) // CHUNK_SUBLANES) * CHUNK_SUBLANES)
    grid = (pl.cdiv(G, sb_tile),)

    out3 = pl.pallas_call(
        ffnet_kernel,
        out_shape=jax.ShapeDtypeStruct((OUT_F, G, LANES), jnp.float32),
        grid=grid,
        in_specs=[
            pl.BlockSpec(memory_space=pltpu.MemorySpace.SMEM),   # w1 [4, 5]
            pl.BlockSpec(memory_space=pltpu.MemorySpace.SMEM),   # b1 [5]
            pl.BlockSpec(memory_space=pltpu.MemorySpace.SMEM),   # w2 [5, 4]
            pl.BlockSpec(memory_space=pltpu.MemorySpace.SMEM),   # b2 [4]
            pl.BlockSpec((IN_F, sb_tile, LANES), lambda i: (0, i, 0)),
        ],
        out_specs=pl.BlockSpec((OUT_F, sb_tile, LANES), lambda i: (0, i, 0)),
        compiler_params=pltpu.CompilerParams(
            # Batch tiles are independent -> shard across TCs on v7x megacore
            # (documentation-only on single-TC v5e/v6e).
            dimension_semantics=("parallel",),
        ),
    )(w1, b1, w2, b2, x3)

    out = out3.reshape(OUT_F, Bp)[:, :B].T                       # back to [B, 4]
    return out.reshape(-1, 2, 2)                                 # .reshape(-1, 2, 2)


def init_params(key):
    """Deterministic init mimicking nn.Linear's U(-1/sqrt(fan_in), 1/sqrt(fan_in))."""
    k1, k2, k3, k4 = jax.random.split(key, 4)
    bound1 = 1.0 / jnp.sqrt(4.0)
    w1 = jax.random.uniform(k1, (IN_F, HID_F), jnp.float32, -bound1, bound1)
    b1 = jax.random.uniform(k2, (HID_F,), jnp.float32, -bound1, bound1)
    bound2 = 1.0 / jnp.sqrt(5.0)
    w2 = jax.random.uniform(k3, (HID_F, OUT_F), jnp.float32, -bound2, bound2)
    b2 = jax.random.uniform(k4, (OUT_F,), jnp.float32, -bound2, bound2)
    return w1, b1, w2, b2


def model1_reference(x, w1, b1, w2, b2):
    """Pure-JAX reference for correctness check."""
    B = x.shape[0]
    x_flat = x.reshape(B, IN_F)
    h = jnp.maximum(x_flat @ w1 + b1, 0.0)
    o = h @ w2 + b2
    return o.reshape(-1, 2, 2)


if __name__ == "__main__":
    key = jax.random.PRNGKey(0)
    k_params, k_x, k_x2 = jax.random.split(key, 3)

    w1, b1, w2, b2 = init_params(k_params)

    # Small batch consistent with Model1: [B=8, 2, 2] -> Flatten -> [8, 4].
    x = jax.random.normal(k_x, (8, 2, 2), jnp.float32)
    out = jax.block_until_ready(model1_forward(x, w1, b1, w2, b2))
    ref = model1_reference(x, w1, b1, w2, b2)
    assert out.shape == (8, 2, 2), out.shape
    assert jnp.allclose(out, ref, atol=1e-5, rtol=1e-5), "mismatch vs reference (B=8)"

    # Non-multiple-of-128 batch with a deliberately small tile to exercise the
    # multi-step grid, the masked tail block, and the inner chunk loop.
    x_big = jax.random.normal(k_x2, (1031, 2, 2), jnp.float32)
    out_big = jax.block_until_ready(
        model1_forward(x_big, w1, b1, w2, b2, max_sb_tile=8))
    ref_big = model1_reference(x_big, w1, b1, w2, b2)
    assert out_big.shape == (1031, 2, 2), out_big.shape
    assert jnp.allclose(out_big, ref_big, atol=1e-5, rtol=1e-5), \
        "mismatch vs reference (B=1031)"

    print("KERNEL_OK")
</pallas_src>

<mosaic_0001>
module attributes {stable_mosaic.version = 11 : i64} {
  func.func @ffnet_kernel(%arg0: i32, %arg1: memref<4x5xf32, #tpu.memory_space<smem>>, %arg2: memref<5xf32, #tpu.memory_space<smem>>, %arg3: memref<5x4xf32, #tpu.memory_space<smem>>, %arg4: memref<4xf32, #tpu.memory_space<smem>>, %arg5: memref<4x8x128xf32, #tpu.memory_space<vmem>>, %arg6: memref<4x8x128xf32, #tpu.memory_space<vmem>>) attributes {dimension_semantics = [#tpu.dimension_semantics<parallel>], iteration_bounds = array<i64: 1>, scalar_prefetch = 0 : i64, scratch_operands = 0 : i64, tpu.core_type = #tpu.core_type<tc>, window_params = [{transform_indices = @transform_0, window_bounds = array<i64: 4, 5>}, {transform_indices = @transform_1, window_bounds = array<i64: 5>}, {transform_indices = @transform_2, window_bounds = array<i64: 5, 4>}, {transform_indices = @transform_3, window_bounds = array<i64: 4>}, {transform_indices = @transform_4, window_bounds = array<i64: 4, 8, 128>}, {transform_indices = @transform_5, window_bounds = array<i64: 4, 8, 128>}]} {
    %c0 = arith.constant 0 : index
    %c0_0 = arith.constant 0 : index
    %0 = memref.load %arg1[%c0, %c0_0] : memref<4x5xf32, #tpu.memory_space<smem>>
    %c0_1 = arith.constant 0 : index
    %c1 = arith.constant 1 : index
    %1 = memref.load %arg1[%c0_1, %c1] : memref<4x5xf32, #tpu.memory_space<smem>>
    %c0_2 = arith.constant 0 : index
    %c2 = arith.constant 2 : index
    %2 = memref.load %arg1[%c0_2, %c2] : memref<4x5xf32, #tpu.memory_space<smem>>
    %c0_3 = arith.constant 0 : index
    %c3 = arith.constant 3 : index
    %3 = memref.load %arg1[%c0_3, %c3] : memref<4x5xf32, #tpu.memory_space<smem>>
    %c0_4 = arith.constant 0 : index
    %c4 = arith.constant 4 : index
    %4 = memref.load %arg1[%c0_4, %c4] : memref<4x5xf32, #tpu.memory_space<smem>>
    %c1_5 = arith.constant 1 : index
    %c0_6 = arith.constant 0 : index
    %5 = memref.load %arg1[%c1_5, %c0_6] : memref<4x5xf32, #tpu.memory_space<smem>>
    %c1_7 = arith.constant 1 : index
    %c1_8 = arith.constant 1 : index
    %6 = memref.load %arg1[%c1_7, %c1_8] : memref<4x5xf32, #tpu.memory_space<smem>>
    %c1_9 = arith.constant 1 : index
    %c2_10 = arith.constant 2 : index
    %7 = memref.load %arg1[%c1_9, %c2_10] : memref<4x5xf32, #tpu.memory_space<smem>>
    %c1_11 = arith.constant 1 : index
    %c3_12 = arith.constant 3 : index
    %8 = memref.load %arg1[%c1_11, %c3_12] : memref<4x5xf32, #tpu.memory_space<smem>>
    %c1_13 = arith.constant 1 : index
    %c4_14 = arith.constant 4 : index
    %9 = memref.load %arg1[%c1_13, %c4_14] : memref<4x5xf32, #tpu.memory_space<smem>>
    %c2_15 = arith.constant 2 : index
    %c0_16 = arith.constant 0 : index
    %10 = memref.load %arg1[%c2_15, %c0_16] : memref<4x5xf32, #tpu.memory_space<smem>>
    %c2_17 = arith.constant 2 : index
    %c1_18 = arith.constant 1 : index
    %11 = memref.load %arg1[%c2_17, %c1_18] : memref<4x5xf32, #tpu.memory_space<smem>>
    %c2_19 = arith.constant 2 : index
    %c2_20 = arith.constant 2 : index
    %12 = memref.load %arg1[%c2_19, %c2_20] : memref<4x5xf32, #tpu.memory_space<smem>>
    %c2_21 = arith.constant 2 : index
    %c3_22 = arith.constant 3 : index
    %13 = memref.load %arg1[%c2_21, %c3_22] : memref<4x5xf32, #tpu.memory_space<smem>>
    %c2_23 = arith.constant 2 : index
    %c4_24 = arith.constant 4 : index
    %14 = memref.load %arg1[%c2_23, %c4_24] : memref<4x5xf32, #tpu.memory_space<smem>>
    %c3_25 = arith.constant 3 : index
    %c0_26 = arith.constant 0 : index
    %15 = memref.load %arg1[%c3_25, %c0_26] : memref<4x5xf32, #tpu.memory_space<smem>>
    %c3_27 = arith.constant 3 : index
    %c1_28 = arith.constant 1 : index
    %16 = memref.load %arg1[%c3_27, %c1_28] : memref<4x5xf32, #tpu.memory_space<smem>>
    %c3_29 = arith.constant 3 : index
    %c2_30 = arith.constant 2 : index
    %17 = memref.load %arg1[%c3_29, %c2_30] : memref<4x5xf32, #tpu.memory_space<smem>>
    %c3_31 = arith.constant 3 : index
    %c3_32 = arith.constant 3 : index
    %18 = memref.load %arg1[%c3_31, %c3_32] : memref<4x5xf32, #tpu.memory_space<smem>>
    %c3_33 = arith.constant 3 : index
    %c4_34 = arith.constant 4 : index
    %19 = memref.load %arg1[%c3_33, %c4_34] : memref<4x5xf32, #tpu.memory_space<smem>>
    %c0_35 = arith.constant 0 : index
    %20 = memref.load %arg2[%c0_35] : memref<5xf32, #tpu.memory_space<smem>>
    %c1_36 = arith.constant 1 : index
    %21 = memref.load %arg2[%c1_36] : memref<5xf32, #tpu.memory_space<smem>>
    %c2_37 = arith.constant 2 : index
    %22 = memref.load %arg2[%c2_37] : memref<5xf32, #tpu.memory_space<smem>>
    %c3_38 = arith.constant 3 : index
    %23 = memref.load %arg2[%c3_38] : memref<5xf32, #tpu.memory_space<smem>>
    %c4_39 = arith.constant 4 : index
    %24 = memref.load %arg2[%c4_39] : memref<5xf32, #tpu.memory_space<smem>>
    %c0_40 = arith.constant 0 : index
    %c0_41 = arith.constant 0 : index
    %25 = memref.load %arg3[%c0_40, %c0_41] : memref<5x4xf32, #tpu.memory_space<smem>>
    %c0_42 = arith.constant 0 : index
    %c1_43 = arith.constant 1 : index
    %26 = memref.load %arg3[%c0_42, %c1_43] : memref<5x4xf32, #tpu.memory_space<smem>>
    %c0_44 = arith.constant 0 : index
    %c2_45 = arith.constant 2 : index
    %27 = memref.load %arg3[%c0_44, %c2_45] : memref<5x4xf32, #tpu.memory_space<smem>>
    %c0_46 = arith.constant 0 : index
    %c3_47 = arith.constant 3 : index
    %28 = memref.load %arg3[%c0_46, %c3_47] : memref<5x4xf32, #tpu.memory_space<smem>>
    %c1_48 = arith.constant 1 : index
    %c0_49 = arith.constant 0 : index
    %29 = memref.load %arg3[%c1_48, %c0_49] : memref<5x4xf32, #tpu.memory_space<smem>>
    %c1_50 = arith.constant 1 : index
    %c1_51 = arith.constant 1 : index
    %30 = memref.load %arg3[%c1_50, %c1_51] : memref<5x4xf32, #tpu.memory_space<smem>>
    %c1_52 = arith.constant 1 : index
    %c2_53 = arith.constant 2 : index
    %31 = memref.load %arg3[%c1_52, %c2_53] : memref<5x4xf32, #tpu.memory_space<smem>>
    %c1_54 = arith.constant 1 : index
    %c3_55 = arith.constant 3 : index
    %32 = memref.load %arg3[%c1_54, %c3_55] : memref<5x4xf32, #tpu.memory_space<smem>>
    %c2_56 = arith.constant 2 : index
    %c0_57 = arith.constant 0 : index
    %33 = memref.load %arg3[%c2_56, %c0_57] : memref<5x4xf32, #tpu.memory_space<smem>>
    %c2_58 = arith.constant 2 : index
    %c1_59 = arith.constant 1 : index
    %34 = memref.load %arg3[%c2_58, %c1_59] : memref<5x4xf32, #tpu.memory_space<smem>>
    %c2_60 = arith.constant 2 : index
    %c2_61 = arith.constant 2 : index
    %35 = memref.load %arg3[%c2_60, %c2_61] : memref<5x4xf32, #tpu.memory_space<smem>>
    %c2_62 = arith.constant 2 : index
    %c3_63 = arith.constant 3 : index
    %36 = memref.load %arg3[%c2_62, %c3_63] : memref<5x4xf32, #tpu.memory_space<smem>>
    %c3_64 = arith.constant 3 : index
    %c0_65 = arith.constant 0 : index
    %37 = memref.load %arg3[%c3_64, %c0_65] : memref<5x4xf32, #tpu.memory_space<smem>>
    %c3_66 = arith.constant 3 : index
    %c1_67 = arith.constant 1 : index
    %38 = memref.load %arg3[%c3_66, %c1_67] : memref<5x4xf32, #tpu.memory_space<smem>>
    %c3_68 = arith.constant 3 : index
    %c2_69 = arith.constant 2 : index
    %39 = memref.load %arg3[%c3_68, %c2_69] : memref<5x4xf32, #tpu.memory_space<smem>>
    %c3_70 = arith.constant 3 : index
    %c3_71 = arith.constant 3 : index
    %40 = memref.load %arg3[%c3_70, %c3_71] : memref<5x4xf32, #tpu.memory_space<smem>>
    %c4_72 = arith.constant 4 : index
    %c0_73 = arith.constant 0 : index
    %41 = memref.load %arg3[%c4_72, %c0_73] : memref<5x4xf32, #tpu.memory_space<smem>>
    %c4_74 = arith.constant 4 : index
    %c1_75 = arith.constant 1 : index
    %42 = memref.load %arg3[%c4_74, %c1_75] : memref<5x4xf32, #tpu.memory_space<smem>>
    %c4_76 = arith.constant 4 : index
    %c2_77 = arith.constant 2 : index
    %43 = memref.load %arg3[%c4_76, %c2_77] : memref<5x4xf32, #tpu.memory_space<smem>>
    %c4_78 = arith.constant 4 : index
    %c3_79 = arith.constant 3 : index
    %44 = memref.load %arg3[%c4_78, %c3_79] : memref<5x4xf32, #tpu.memory_space<smem>>
    %c0_80 = arith.constant 0 : index
    %45 = memref.load %arg4[%c0_80] : memref<4xf32, #tpu.memory_space<smem>>
    %c1_81 = arith.constant 1 : index
    %46 = memref.load %arg4[%c1_81] : memref<4xf32, #tpu.memory_space<smem>>
    %c2_82 = arith.constant 2 : index
    %47 = memref.load %arg4[%c2_82] : memref<4xf32, #tpu.memory_space<smem>>
    %c3_83 = arith.constant 3 : index
    %48 = memref.load %arg4[%c3_83] : memref<4xf32, #tpu.memory_space<smem>>
    %c0_i32 = arith.constant 0 : i32
    %c8_i32 = arith.constant 8 : i32
    %49 = arith.muli %c0_i32, %c8_i32 : i32
    %50 = tpu.assume_multiple %49, 8 : i32
    %c0_84 = arith.constant 0 : index
    %51 = arith.index_cast %50 : i32 to index
    %c0_85 = arith.constant 0 : index
    %52 = vector.load %arg5[%c0_84, %51, %c0_85] : memref<4x8x128xf32, #tpu.memory_space<vmem>>, vector<1x8x128xf32>
    %53 = vector.shape_cast %52 : vector<1x8x128xf32> to vector<8x128xf32>
    %c1_86 = arith.constant 1 : index
    %54 = arith.index_cast %50 : i32 to index
    %c0_87 = arith.constant 0 : index
    %55 = vector.load %arg5[%c1_86, %54, %c0_87] : memref<4x8x128xf32, #tpu.memory_space<vmem>>, vector<1x8x128xf32>
    %56 = vector.shape_cast %55 : vector<1x8x128xf32> to vector<8x128xf32>
    %c2_88 = arith.constant 2 : index
    %57 = arith.index_cast %50 : i32 to index
    %c0_89 = arith.constant 0 : index
    %58 = vector.load %arg5[%c2_88, %57, %c0_89] : memref<4x8x128xf32, #tpu.memory_space<vmem>>, vector<1x8x128xf32>
    %59 = vector.shape_cast %58 : vector<1x8x128xf32> to vector<8x128xf32>
    %c3_90 = arith.constant 3 : index
    %60 = arith.index_cast %50 : i32 to index
    %c0_91 = arith.constant 0 : index
    %61 = vector.load %arg5[%c3_90, %60, %c0_91] : memref<4x8x128xf32, #tpu.memory_space<vmem>>, vector<1x8x128xf32>
    %62 = vector.shape_cast %61 : vector<1x8x128xf32> to vector<8x128xf32>
    %63 = vector.broadcast %0 : f32 to vector<8x128xf32>
    %64 = arith.mulf %53, %63 : vector<8x128xf32>
    %65 = vector.broadcast %5 : f32 to vector<8x128xf32>
    %66 = arith.mulf %56, %65 : vector<8x128xf32>
    %67 = arith.addf %64, %66 : vector<8x128xf32>
    %68 = vector.broadcast %10 : f32 to vector<8x128xf32>
    %69 = arith.mulf %59, %68 : vector<8x128xf32>
    %70 = arith.addf %67, %69 : vector<8x128xf32>
    %71 = vector.broadcast %15 : f32 to vector<8x128xf32>
    %72 = arith.mulf %62, %71 : vector<8x128xf32>
    %73 = arith.addf %70, %72 : vector<8x128xf32>
    %74 = vector.broadcast %20 : f32 to vector<8x128xf32>
    %75 = arith.addf %73, %74 : vector<8x128xf32>
    %cst = arith.constant 0.000000e+00 : f32
    %76 = vector.broadcast %cst : f32 to vector<8x128xf32>
    %77 = arith.maximumf %75, %76 : vector<8x128xf32>
    %78 = vector.broadcast %1 : f32 to vector<8x128xf32>
    %79 = arith.mulf %53, %78 : vector<8x128xf32>
    %80 = vector.broadcast %6 : f32 to vector<8x128xf32>
    %81 = arith.mulf %56, %80 : vector<8x128xf32>
    %82 = arith.addf %79, %81 : vector<8x128xf32>
    %83 = vector.broadcast %11 : f32 to vector<8x128xf32>
    %84 = arith.mulf %59, %83 : vector<8x128xf32>
    %85 = arith.addf %82, %84 : vector<8x128xf32>
    %86 = vector.broadcast %16 : f32 to vector<8x128xf32>
    %87 = arith.mulf %62, %86 : vector<8x128xf32>
    %88 = arith.addf %85, %87 : vector<8x128xf32>
    %89 = vector.broadcast %21 : f32 to vector<8x128xf32>
    %90 = arith.addf %88, %89 : vector<8x128xf32>
    %cst_92 = arith.constant 0.000000e+00 : f32
    %91 = vector.broadcast %cst_92 : f32 to vector<8x128xf32>
    %92 = arith.maximumf %90, %91 : vector<8x128xf32>
    %93 = vector.broadcast %2 : f32 to vector<8x128xf32>
    %94 = arith.mulf %53, %93 : vector<8x128xf32>
    %95 = vector.broadcast %7 : f32 to vector<8x128xf32>
    %96 = arith.mulf %56, %95 : vector<8x128xf32>
    %97 = arith.addf %94, %96 : vector<8x128xf32>
    %98 = vector.broadcast %12 : f32 to vector<8x128xf32>
    %99 = arith.mulf %59, %98 : vector<8x128xf32>
    %100 = arith.addf %97, %99 : vector<8x128xf32>
    %101 = vector.broadcast %17 : f32 to vector<8x128xf32>
    %102 = arith.mulf %62, %101 : vector<8x128xf32>
    %103 = arith.addf %100, %102 : vector<8x128xf32>
    %104 = vector.broadcast %22 : f32 to vector<8x128xf32>
    %105 = arith.addf %103, %104 : vector<8x128xf32>
    %cst_93 = arith.constant 0.000000e+00 : f32
    %106 = vector.broadcast %cst_93 : f32 to vector<8x128xf32>
    %107 = arith.maximumf %105, %106 : vector<8x128xf32>
    %108 = vector.broadcast %3 : f32 to vector<8x128xf32>
    %109 = arith.mulf %53, %108 : vector<8x128xf32>
    %110 = vector.broadcast %8 : f32 to vector<8x128xf32>
    %111 = arith.mulf %56, %110 : vector<8x128xf32>
    %112 = arith.addf %109, %111 : vector<8x128xf32>
    %113 = vector.broadcast %13 : f32 to vector<8x128xf32>
    %114 = arith.mulf %59, %113 : vector<8x128xf32>
    %115 = arith.addf %112, %114 : vector<8x128xf32>
    %116 = vector.broadcast %18 : f32 to vector<8x128xf32>
    %117 = arith.mulf %62, %116 : vector<8x128xf32>
    %118 = arith.addf %115, %117 : vector<8x128xf32>
    %119 = vector.broadcast %23 : f32 to vector<8x128xf32>
    %120 = arith.addf %118, %119 : vector<8x128xf32>
    %cst_94 = arith.constant 0.000000e+00 : f32
    %121 = vector.broadcast %cst_94 : f32 to vector<8x128xf32>
    %122 = arith.maximumf %120, %121 : vector<8x128xf32>
    %123 = vector.broadcast %4 : f32 to vector<8x128xf32>
    %124 = arith.mulf %53, %123 : vector<8x128xf32>
    %125 = vector.broadcast %9 : f32 to vector<8x128xf32>
    %126 = arith.mulf %56, %125 : vector<8x128xf32>
    %127 = arith.addf %124, %126 : vector<8x128xf32>
    %128 = vector.broadcast %14 : f32 to vector<8x128xf32>
    %129 = arith.mulf %59, %128 : vector<8x128xf32>
    %130 = arith.addf %127, %129 : vector<8x128xf32>
    %131 = vector.broadcast %19 : f32 to vector<8x128xf32>
    %132 = arith.mulf %62, %131 : vector<8x128xf32>
    %133 = arith.addf %130, %132 : vector<8x128xf32>
    %134 = vector.broadcast %24 : f32 to vector<8x128xf32>
    %135 = arith.addf %133, %134 : vector<8x128xf32>
    %cst_95 = arith.constant 0.000000e+00 : f32
    %136 = vector.broadcast %cst_95 : f32 to vector<8x128xf32>
    %137 = arith.maximumf %135, %136 : vector<8x128xf32>
    %138 = vector.broadcast %25 : f32 to vector<8x128xf32>
    %139 = arith.mulf %77, %138 : vector<8x128xf32>
    %140 = vector.broadcast %29 : f32 to vector<8x128xf32>
    %141 = arith.mulf %92, %140 : vector<8x128xf32>
    %142 = arith.addf %139, %141 : vector<8x128xf32>
    %143 = vector.broadcast %33 : f32 to vector<8x128xf32>
    %144 = arith.mulf %107, %143 : vector<8x128xf32>
    %145 = arith.addf %142, %144 : vector<8x128xf32>
    %146 = vector.broadcast %37 : f32 to vector<8x128xf32>
    %147 = arith.mulf %122, %146 : vector<8x128xf32>
    %148 = arith.addf %145, %147 : vector<8x128xf32>
    %149 = vector.broadcast %41 : f32 to vector<8x128xf32>
    %150 = arith.mulf %137, %149 : vector<8x128xf32>
    %151 = arith.addf %148, %150 : vector<8x128xf32>
    %152 = vector.broadcast %45 : f32 to vector<8x128xf32>
    %153 = arith.addf %151, %152 : vector<8x128xf32>
    %c0_96 = arith.constant 0 : index
    %154 = arith.index_cast %50 : i32 to index
    %c0_97 = arith.constant 0 : index
    %155 = vector.load %arg6[%c0_96, %154, %c0_97] : memref<4x8x128xf32, #tpu.memory_space<vmem>>, vector<1x8x128xf32>
    %156 = vector.shape_cast %155 : vector<1x8x128xf32> to vector<8x128xf32>
    %157 = vector.shape_cast %153 : vector<8x128xf32> to vector<1x8x128xf32>
    tpu.vector_store %arg6[%c0_96, %154, %c0_97], %157 {strides = array<i32>} : memref<4x8x128xf32, #tpu.memory_space<vmem>>, vector<1x8x128xf32>,
    %158 = vector.broadcast %26 : f32 to vector<8x128xf32>
    %159 = arith.mulf %77, %158 : vector<8x128xf32>
    %160 = vector.broadcast %30 : f32 to vector<8x128xf32>
    %161 = arith.mulf %92, %160 : vector<8x128xf32>
    %162 = arith.addf %159, %161 : vector<8x128xf32>
    %163 = vector.broadcast %34 : f32 to vector<8x128xf32>
    %164 = arith.mulf %107, %163 : vector<8x128xf32>
    %165 = arith.addf %162, %164 : vector<8x128xf32>
    %166 = vector.broadcast %38 : f32 to vector<8x128xf32>
    %167 = arith.mulf %122, %166 : vector<8x128xf32>
    %168 = arith.addf %165, %167 : vector<8x128xf32>
    %169 = vector.broadcast %42 : f32 to vector<8x128xf32>
    %170 = arith.mulf %137, %169 : vector<8x128xf32>
    %171 = arith.addf %168, %170 : vector<8x128xf32>
    %172 = vector.broadcast %46 : f32 to vector<8x128xf32>
    %173 = arith.addf %171, %172 : vector<8x128xf32>
    %c1_98 = arith.constant 1 : index
    %174 = arith.index_cast %50 : i32 to index
    %c0_99 = arith.constant 0 : index
    %175 = vector.load %arg6[%c1_98, %174, %c0_99] : memref<4x8x128xf32, #tpu.memory_space<vmem>>, vector<1x8x128xf32>
    %176 = vector.shape_cast %175 : vector<1x8x128xf32> to vector<8x128xf32>
    %177 = vector.shape_cast %173 : vector<8x128xf32> to vector<1x8x128xf32>
    tpu.vector_store %arg6[%c1_98, %174, %c0_99], %177 {strides = array<i32>} : memref<4x8x128xf32, #tpu.memory_space<vmem>>, vector<1x8x128xf32>,
    %178 = vector.broadcast %27 : f32 to vector<8x128xf32>
    %179 = arith.mulf %77, %178 : vector<8x128xf32>
    %180 = vector.broadcast %31 : f32 to vector<8x128xf32>
    %181 = arith.mulf %92, %180 : vector<8x128xf32>
    %182 = arith.addf %179, %181 : vector<8x128xf32>
    %183 = vector.broadcast %35 : f32 to vector<8x128xf32>
    %184 = arith.mulf %107, %183 : vector<8x128xf32>
    %185 = arith.addf %182, %184 : vector<8x128xf32>
    %186 = vector.broadcast %39 : f32 to vector<8x128xf32>
    %187 = arith.mulf %122, %186 : vector<8x128xf32>
    %188 = arith.addf %185, %187 : vector<8x128xf32>
    %189 = vector.broadcast %43 : f32 to vector<8x128xf32>
    %190 = arith.mulf %137, %189 : vector<8x128xf32>
    %191 = arith.addf %188, %190 : vector<8x128xf32>
    %192 = vector.broadcast %47 : f32 to vector<8x128xf32>
    %193 = arith.addf %191, %192 : vector<8x128xf32>
    %c2_100 = arith.constant 2 : index
    %194 = arith.index_cast %50 : i32 to index
    %c0_101 = arith.constant 0 : index
    %195 = vector.load %arg6[%c2_100, %194, %c0_101] : memref<4x8x128xf32, #tpu.memory_space<vmem>>, vector<1x8x128xf32>
    %196 = vector.shape_cast %195 : vector<1x8x128xf32> to vector<8x128xf32>
    %197 = vector.shape_cast %193 : vector<8x128xf32> to vector<1x8x128xf32>
    tpu.vector_store %arg6[%c2_100, %194, %c0_101], %197 {strides = array<i32>} : memref<4x8x128xf32, #tpu.memory_space<vmem>>, vector<1x8x128xf32>,
    %198 = vector.broadcast %28 : f32 to vector<8x128xf32>
    %199 = arith.mulf %77, %198 : vector<8x128xf32>
    %200 = vector.broadcast %32 : f32 to vector<8x128xf32>
    %201 = arith.mulf %92, %200 : vector<8x128xf32>
    %202 = arith.addf %199, %201 : vector<8x128xf32>
    %203 = vector.broadcast %36 : f32 to vector<8x128xf32>
    %204 = arith.mulf %107, %203 : vector<8x128xf32>
    %205 = arith.addf %202, %204 : vector<8x128xf32>
    %206 = vector.broadcast %40 : f32 to vector<8x128xf32>
    %207 = arith.mulf %122, %206 : vector<8x128xf32>
    %208 = arith.addf %205, %207 : vector<8x128xf32>
    %209 = vector.broadcast %44 : f32 to vector<8x128xf32>
    %210 = arith.mulf %137, %209 : vector<8x128xf32>
    %211 = arith.addf %208, %210 : vector<8x128xf32>
    %212 = vector.broadcast %48 : f32 to vector<8x128xf32>
    %213 = arith.addf %211, %212 : vector<8x128xf32>
    %c3_102 = arith.constant 3 : index
    %214 = arith.index_cast %50 : i32 to index
    %c0_103 = arith.constant 0 : index
    %215 = vector.load %arg6[%c3_102, %214, %c0_103] : memref<4x8x128xf32, #tpu.memory_space<vmem>>, vector<1x8x128xf32>
    %216 = vector.shape_cast %215 : vector<1x8x128xf32> to vector<8x128xf32>
    %217 = vector.shape_cast %213 : vector<8x128xf32> to vector<1x8x128xf32>
    tpu.vector_store %arg6[%c3_102, %214, %c0_103], %217 {strides = array<i32>} : memref<4x8x128xf32, #tpu.memory_space<vmem>>, vector<1x8x128xf32>,
    %c1_i32 = arith.constant 1 : i32
    return
  }
  func.func @transform_0(%arg0: i32) -> (i32, i32) {
    %c0_i32 = arith.constant 0 : i32
    %c0_i32_0 = arith.constant 0 : i32
    %c0_i32_1 = arith.constant 0 : i32
    return %c0_i32, %c0_i32_0 : i32, i32
  }
  func.func @transform_1(%arg0: i32) -> i32 {
    %c0_i32 = arith.constant 0 : i32
    %c0_i32_0 = arith.constant 0 : i32
    return %c0_i32 : i32
  }
  func.func @transform_2(%arg0: i32) -> (i32, i32) {
    %c0_i32 = arith.constant 0 : i32
    %c0_i32_0 = arith.constant 0 : i32
    %c0_i32_1 = arith.constant 0 : i32
    return %c0_i32, %c0_i32_0 : i32, i32
  }
  func.func @transform_3(%arg0: i32) -> i32 {
    %c0_i32 = arith.constant 0 : i32
    %c0_i32_0 = arith.constant 0 : i32
    return %c0_i32 : i32
  }
  func.func @transform_4(%arg0: i32) -> (i32, i32, i32) {
    %c0_i32 = arith.constant 0 : i32
    %c0_i32_0 = arith.constant 0 : i32
    %c0_i32_1 = arith.constant 0 : i32
    return %c0_i32, %arg0, %c0_i32_0 : i32, i32, i32
  }
  func.func @transform_5(%arg0: i32) -> (i32, i32, i32) {
    %c0_i32 = arith.constant 0 : i32
    %c0_i32_0 = arith.constant 0 : i32
    %c0_i32_1 = arith.constant 0 : i32
    return %c0_i32, %arg0, %c0_i32_0 : i32, i32, i32
  }
}

</mosaic_0001>

<bundles_post_ra>
// kernel: model1_forward.1
= control target key start
LH: loop header
LB: loop body
LE: loop exit
PB: predicated region body
PF: predicated region fallthrough
CT: control target
= control target key end

     0   :  { %10 = vsyncpa [#allocation4], 0  ;;  %s706_s0 = inlined_call_operand.vmem [shape: f32[4,5], index: 0, kind: input, shape index: {}]   ;;  %s707_s1 = inlined_call_operand.vmem [shape: f32[5], index: 1, kind: input, shape index: {}]   ;;  %s708_s2 = inlined_call_operand.vmem [shape: f32[5,4], index: 2, kind: input, shape index: {}]   ;;  %s709_s3 = inlined_call_operand.vmem [shape: f32[4], index: 3, kind: input, shape index: {}]   ;;  %s710_s4 = inlined_call_operand.vmem [shape: f32[4,1,128], index: 4, kind: input, shape index: {}]   ;;  %s711_s5 = inlined_call_operand.hbm [shape: f32[4,1,128], index: 5, kind: output, shape index: {}]  }
   0x1   :  { %11 = vsyncpa [#allocation6], 0 }
   0x2   :  { %12 = vsyncpa [#allocation9], 0  ;;  %s30_s20 = sshll.u32 %s707_s1, 4  ;;  %s31_s20 = int_to_ptr.vmem [resolvable:$true] %s30_s20 }
   0x3   :  { %13 = vsyncpa [#allocation3], 0  ;;  %v71_v0 = vld [vmem:[%s710_s4] sm:$0x1]  ;;  %s20_s25 = sshll.u32 %s706_s0, 4  ;;  %s428_s1 = scalar_lea.vmem %s31_s20, 16  ;;  %s21_s25 = int_to_ptr.vmem [resolvable:$true] %s20_s25 }
   0x4   :  { %72 = vst [vmem:[#allocation10] sm:$0x1] %v71_v0  ;;  %v73_v1 = vld [vmem:[%s710_s4 + $0x1] sm:$0x1]  ;;  %v75_v2 = vld [vmem:[%s710_s4 + $0x2] sm:$0x1]  ;;  %p429_p0 = scmp.ne.s32.totalorder %s31_s20, %s428_s1  ;;  %p433_p1 = scmp.lt.s32.totalorder %s31_s20, %s31_s20 }
   0x5   :  { %p434_p2 = scmp.lt.s32.totalorder %s428_s1, %s428_s1 }
   0x7   :  { %p435_p3 = por %p434_p2, %p433_p1 }
   0x9   :  { %p436_p4 = pnand %p435_p3, %p429_p0 }
   0xb   :  { %439 = shalt.err (!%p436_p4)
}
   0xc   :  { %s484_s30 = smov [#allocation5]   ;;  %74 = vst [vmem:[#allocation10 + $0x8] sm:$0x1] %v73_v1  ;;  %76 = vst [vmem:[#allocation10 + $0x10] sm:$0x1] %v75_v2  ;;  %s440_s7 = scalar_lea.vmem %s21_s25, 64 }
   0xd   :  { %33 = dma.vmem_to_smem %s31_s20, 16, %s484_s30, [#allocation6]   ;;  %v77_v3 = vld [vmem:[%s710_s4 + $0x3] sm:$0x1] }
   0xe   :  { %78 = vst [vmem:[#allocation10 + $0x18] sm:$0x1] %v77_v3  ;;  %p441_p5 = scmp.ne.s32.totalorder %s21_s25, %s440_s7  ;;  %p445_p6 = scmp.lt.s32.totalorder %s21_s25, %s21_s25 }
   0xf   :  { %p446_p7 = scmp.lt.s32.totalorder %s440_s7, %s440_s7 }
  0x11   :  { %p447_p8 = por %p446_p7, %p445_p6 }
  0x13   :  { %p448_p9 = pnand %p447_p8, %p441_p5 }
  0x15   :  { %451 = shalt.err (!%p448_p9)
}
  0x16   :  { %s485_s8 = smov [#allocation2]   ;;  %s40_s11 = sshll.u32 %s708_s2, 4  ;;  %s41_s11 = int_to_ptr.vmem [resolvable:$true] %s40_s11 }
  0x17   :  { %23 = dma.vmem_to_smem %s21_s25, 64, %s485_s8, [#allocation4]  }
  0x18   :  { %s50_s4 = sshll.u32 %s709_s3, 4  ;;  %s452_s14 = scalar_lea.vmem %s41_s11, 128  ;;  %s51_s4 = int_to_ptr.vmem [resolvable:$true] %s50_s4 }
  0x19   :  { %p453_p10 = scmp.ne.s32.totalorder %s41_s11, %s452_s14  ;;  %p457_p11 = scmp.lt.s32.totalorder %s41_s11, %s41_s11 }
  0x1a   :  { %p458_p12 = scmp.lt.s32.totalorder %s452_s14, %s452_s14 }
  0x1c   :  { %p459_p13 = por %p458_p12, %p457_p11 }
  0x1e   :  { %p460_p0 = pnand %p459_p13, %p453_p10 }
  0x20   :  { %463 = shalt.err (!%p460_p0)
}
  0x21   :  { %s486_s15 = smov [#allocation7]   ;;  %s464_s16 = scalar_lea.vmem %s51_s4, 16 }
  0x22   :  { %43 = dma.vmem_to_smem %s41_s11, 128, %s486_s15, [#allocation6]  }
  0x23   :  { %p465_p1 = scmp.ne.s32.totalorder %s51_s4, %s464_s16  ;;  %p469_p2 = scmp.lt.s32.totalorder %s51_s4, %s51_s4 }
  0x24   :  { %p470_p3 = scmp.lt.s32.totalorder %s464_s16, %s464_s16 }
  0x26   :  { %p471_p4 = por %p470_p3, %p469_p2 }
  0x28   :  { %p472_p5 = pnand %p471_p4, %p465_p1 }
  0x2a   :  { %475 = shalt.err (!%p472_p5)
}
  0x2b   :  { %s487_s2 = smov [#allocation8]  }
  0x2c   :  { %53 = dma.vmem_to_smem %s51_s4, 16, %s487_s2, [#allocation9]  }
  0x2d   :  { %476 = dma.done.wait [#allocation4], 64  }
  0x2e   :  { %477 = vsyncadd [#allocation4], 4294967232 }
  0x2f   :  { %478 = dma.done.wait [#allocation6], 144  }
  0x30   :  { %479 = vsyncadd [#allocation6], 4294967152 }
  0x31   :  { %480 = dma.done.wait [#allocation9], 16  }
  0x32   :  { %481 = vsyncadd [#allocation9], 4294967280 }
  0x33   :  { %113 = sfence }
  0x34   :  { %s114_s3 = sld [smem:[#allocation2]]  ;;  %s372_s17 = sld [smem:[#allocation2 + $0x1]]  ;;  %v163_v4 = vld [vmem:[#allocation10] sm:$0xff]  ;;  %v567_v5 = vld [vmem:[#allocation10 + $0x8] sm:$0xff]  ;;  %v169_v16 = vld [vmem:[#allocation10 + $0x10] sm:$0xff] }
  0x35   :  { %s373_s18 = sld [smem:[#allocation2 + $0x2]]  ;;  %s374_s19 = sld [smem:[#allocation2 + $0x3]]  ;;  %v172_v25 = vld [vmem:[#allocation10 + $0x18] sm:$0xff] }
  0x36   :  { %s549_s20 = sld [smem:[#allocation2 + $0x4]]  ;;  %s376_s21 = sld [smem:[#allocation2 + $0x80]] }
  0x37   :  { %s551_s22 = sld [smem:[#allocation2 + $0x81]]  ;;  %s553_s23 = sld [smem:[#allocation2 + $0x82]] }
  0x38   :  { %s555_s24 = sld [smem:[#allocation2 + $0x83]]  ;;  %s557_s25 = sld [smem:[#allocation2 + $0x84]] }
  0x39   :  { %s559_s26 = sld [smem:[#allocation2 + $0x100]]  ;;  %s561_s27 = sld [smem:[#allocation2 + $0x101]] }
  0x3a   :  { %s563_s28 = sld [smem:[#allocation2 + $0x102]]  ;;  %s565_s29 = sld [smem:[#allocation2 + $0x103]]  ;;  %v173_v6 = vstv %s114_s3  ;;  %v187_v7 = vstv %s372_s17 }
  0x3b   :  { %s569_s1 = sld [smem:[#allocation2 + $0x180]]  ;;  %v174_v8 = vmul.f32 %v173_v6, %v163_v4  ;;  %v188_v9 = vmul.f32 %v187_v7, %v163_v4  ;;  %v201_v10 = vstv %s373_s18  ;;  %v215_v11 = vstv %s374_s19  ;;  %s571_s30 = sld [smem:[#allocation2 + $0x181]] }
  0x3c   :  { %s573_s0 = sld [smem:[#allocation2 + $0x182]]  ;;  %v175_v12 = vstv %s376_s21  ;;  %v202_v13 = vmul.f32 %v201_v10, %v163_v4  ;;  %v216_v14 = vmul.f32 %v215_v11, %v163_v4  ;;  %v229_v15 = vstv %s549_s20  ;;  %s576_s6 = sld [smem:[#allocation2 + $0x104]] }
  0x3d   :  { %s578_s7 = sld [smem:[#allocation2 + $0x183]]  ;;  %v176_v17 = vmul.f32 %v175_v12, %v567_v5  ;;  %v189_v18 = vstv %s551_s22  ;;  %v203_v19 = vstv %s553_s23  ;;  %v230_v20 = vmul.f32 %v229_v15, %v163_v4  ;;  %s583_s8 = sld [smem:[#allocation5]] }
  0x3e   :  { %s585_s9 = sld [smem:[#allocation5 + $0x1]]  ;;  %v190_v21 = vmul.f32 %v189_v18, %v567_v5  ;;  %v204_v22 = vmul.f32 %v203_v19, %v567_v5  ;;  %v217_v23 = vstv %s555_s24  ;;  %v231_v24 = vstv %s557_s25  ;;  %s591_s10 = sld [smem:[#allocation5 + $0x2]] }
  0x3f   :  { %s593_s11 = sld [smem:[#allocation5 + $0x3]]  ;;  %v177_v26 = vadd.f32 %v176_v17, %v174_v8  ;;  %v178_v27 = vstv %s559_s26  ;;  %v192_v28 = vstv %s561_s27  ;;  %v218_v29 = vmul.f32 %v217_v23, %v567_v5  ;;  %s598_s12 = sld [smem:[#allocation2 + $0x184]] }
  0x40   :  { %v179_v30 = vmul.f32 %v178_v27, %v169_v16  ;;  %v191_v31 = vadd.f32 %v190_v21, %v188_v9  ;;  %v193_v32 = vmul.f32 %v192_v28, %v169_v16  ;;  %v205_v33 = vadd.f32 %v204_v22, %v202_v13  ;;  %s600_s13 = sld [smem:[#allocation5 + $0x4]]  ;;  %s605_s4 = sld [smem:[#allocation7]] }
  0x41   :  { %v181_v34 = vstv %s569_s1  ;;  %v206_v35 = vstv %s563_s28  ;;  %v219_v36 = vadd.f32 %v218_v29, %v216_v14  ;;  %v220_v37 = vstv %s565_s29  ;;  %s607_s14 = sld [smem:[#allocation7 + $0x80]]  ;;  %s620_s3 = sld [smem:[#allocation7 + $0x1]] }
  0x42   :  { %v180_v38 = vadd.f32 %v179_v30, %v177_v26  ;;  %v182_v39 = vmul.f32 %v181_v34, %v172_v25  ;;  %v194_v40 = vadd.f32 %v193_v32, %v191_v31  ;;  %v195_v41 = vstv %s571_s30  ;;  %s611_s15 = sld [smem:[#allocation7 + $0x100]]  ;;  %s625_s17 = sld [smem:[#allocation7 + $0x81]] }
  0x43   :  { %v196_v42 = vmul.f32 %v195_v41, %v172_v25  ;;  %v207_v43 = vmul.f32 %v206_v35, %v169_v16  ;;  %v209_v44 = vstv %s573_s0  ;;  %v221_v45 = vmul.f32 %v220_v37, %v169_v16  ;;  %s613_s16 = sld [smem:[#allocation7 + $0x180]]  ;;  %s627_s18 = sld [smem:[#allocation7 + $0x101]] }
  0x44   :  { %v183_v46 = vadd.f32 %v182_v39, %v180_v38  ;;  %v184_v47 = vstv %s583_s8  ;;  %v198_v48 = vstv %s585_s9  ;;  %v210_v49 = vmul.f32 %v209_v44, %v172_v25  ;;  %s617_s2 = sld [smem:[#allocation7 + $0x200]]  ;;  %s633_s19 = sld [smem:[#allocation7 + $0x181]] }
  0x45   :  { %v197_v50 = vadd.f32 %v196_v42, %v194_v40  ;;  %v208_v51 = vadd.f32 %v207_v43, %v205_v33  ;;  %v212_v52 = vstv %s591_s10  ;;  %v222_v53 = vadd.f32 %v221_v45, %v219_v36  ;;  %s635_s20 = sld [smem:[#allocation7 + $0x201]]  ;;  %s637_s21 = sld [smem:[#allocation8]] }
  0x46   :  { %v185_v54 = vadd.f32 %v184_v47, %v183_v46  ;;  %v223_v55 = vstv %s578_s7  ;;  %v226_v56 = vstv %s593_s11  ;;  %v232_v57 = vmul.f32 %v231_v24, %v567_v5  ;;  %s644_s22 = sld [smem:[#allocation7 + $0x2]]  ;;  %s662_s27 = sld [smem:[#allocation8 + $0x1]] }
  0x47   :  { %v199_v58 = vadd.f32 %v198_v48, %v197_v50  ;;  %v211_v59 = vadd.f32 %v210_v49, %v208_v51  ;;  %v224_v60 = vmul.f32 %v223_v55, %v172_v25  ;;  %v234_v61 = vstv %s576_s6  ;;  %s646_s23 = sld [smem:[#allocation7 + $0x82]]  ;;  %s667_s28 = sld [smem:[#allocation7 + $0x3]] }
  0x48   :  { %v630_v62 = vmax.f32 %v185_v54, 0.0  ;;  %v233_v63 = vadd.f32 %v232_v57, %v230_v20  ;;  %v235_v0 = vmul.f32 %v234_v61, %v169_v16  ;;  %v237_v1 = vstv %s598_s12  ;;  %s652_s24 = sld [smem:[#allocation7 + $0x102]]  ;;  %s669_s29 = sld [smem:[#allocation7 + $0x83]] }
  0x49   :  { %v639_v2 = vmax.f32 %v199_v58, 0.0  ;;  %v213_v3 = vadd.f32 %v212_v52, %v211_v59  ;;  %v225_v4 = vadd.f32 %v224_v60, %v222_v53  ;;  %v238_v5 = vmul.f32 %v237_v1, %v172_v25  ;;  %s656_s25 = sld [smem:[#allocation7 + $0x182]]  ;;  %s673_s1 = sld [smem:[#allocation7 + $0x103]] }
  0x4a   :  { %v236_v6 = vadd.f32 %v235_v0, %v233_v63  ;;  %v240_v7 = vstv %s600_s13  ;;  %v243_v8 = vstv %s605_s4  ;;  %v245_v9 = vstv %s607_s14  ;;  %s658_s26 = sld [smem:[#allocation7 + $0x202]]  ;;  %s678_s30 = sld [smem:[#allocation7 + $0x183]] }
  0x4b   :  { %v648_v10 = vmax.f32 %v213_v3, 0.0  ;;  %v227_v11 = vadd.f32 %v226_v56, %v225_v4  ;;  %v244_v12 = vmul.f32 %v243_v8, %v630_v62  ;;  %v246_v13 = vmul.f32 %v245_v9, %v639_v2  ;;  %s680_s0 = sld [smem:[#allocation7 + $0x203]]  ;;  %s683_s6 = sld [smem:[#allocation8 + $0x2]] }
  0x4c   :  { %v239_v14 = vadd.f32 %v238_v5, %v236_v6  ;;  %v248_v15 = vstv %s611_s15  ;;  %v251_v16 = vstv %s613_s16  ;;  %v254_v20 = vstv %s617_s2  ;;  %s416_s7 = sld [smem:[#allocation8 + $0x3]] }
  0x4d   :  { %v228_v17 = vmax.f32 %v227_v11, 0.0  ;;  %v247_v18 = vadd.f32 %v246_v13, %v244_v12  ;;  %v249_v19 = vmul.f32 %v248_v15, %v648_v10  ;;  %v260_v22 = vstv %s620_s3 }
  0x4e   :  { %v241_v21 = vadd.f32 %v240_v7, %v239_v14  ;;  %v262_v23 = vstv %s625_s17  ;;  %v265_v24 = vstv %s627_s18  ;;  %v261_v27 = vmul.f32 %v260_v22, %v630_v62 }
  0x4f   :  { %v250_v25 = vadd.f32 %v249_v19, %v247_v18  ;;  %v252_v26 = vmul.f32 %v251_v16, %v228_v17  ;;  %v263_v28 = vmul.f32 %v262_v23, %v639_v2  ;;  %v266_v30 = vmul.f32 %v265_v24, %v648_v10 }
  0x50   :  { %v242_v29 = vmax.f32 %v241_v21, 0.0  ;;  %v268_v31 = vstv %s633_s19  ;;  %v271_v32 = vstv %s635_s20  ;;  %v257_v34 = vstv %s637_s21 }
  0x51   :  { %v253_v33 = vadd.f32 %v252_v26, %v250_v25  ;;  %v264_v35 = vadd.f32 %v263_v28, %v261_v27  ;;  %v269_v36 = vmul.f32 %v268_v31, %v228_v17  ;;  %v278_v39 = vstv %s644_s22 }
  0x52   :  { %v255_v37 = vmul.f32 %v254_v20, %v242_v29  ;;  %v272_v38 = vmul.f32 %v271_v32, %v242_v29  ;;  %v280_v40 = vstv %s646_s23  ;;  %v279_v42 = vmul.f32 %v278_v39, %v630_v62 }
  0x53   :  { %v267_v41 = vadd.f32 %v266_v30, %v264_v35  ;;  %v281_v43 = vmul.f32 %v280_v40, %v639_v2  ;;  %v283_v44 = vstv %s652_s24  ;;  %v286_v47 = vstv %s656_s25 }
  0x54   :  { %v256_v45 = vadd.f32 %v255_v37, %v253_v33  ;;  %v284_v46 = vmul.f32 %v283_v44, %v648_v10  ;;  %v289_v48 = vstv %s658_s26  ;;  %v274_v50 = vstv %s662_s27 }
  0x55   :  { %v270_v49 = vadd.f32 %v269_v36, %v267_v41  ;;  %v282_v51 = vadd.f32 %v281_v43, %v279_v42  ;;  %v287_v52 = vmul.f32 %v286_v47, %v228_v17  ;;  %v290_v54 = vmul.f32 %v289_v48, %v242_v29 }
  0x56   :  { %v258_v53 = vadd.f32 %v257_v34, %v256_v45  ;;  %v296_v55 = vstv %s667_s28  ;;  %v298_v56 = vstv %s669_s29  ;;  %v301_v61 = vstv %s673_s1 }
  0x57   :  { %v273_v57 = vadd.f32 %v272_v38, %v270_v49  ;;  %v285_v58 = vadd.f32 %v284_v46, %v282_v51  ;;  %v297_v59 = vmul.f32 %v296_v55, %v630_v62  ;;  %v299_v60 = vmul.f32 %v298_v56, %v639_v2 }
  0x58   :  { %259 = vst [vmem:[#allocation11] sm:$0xff] %v258_v53  ;;  %v304_v63 = vstv %s678_s30  ;;  %v307_v0 = vstv %s680_s0  ;;  %v302_v5 = vmul.f32 %v301_v61, %v648_v10  ;;  %v292_v6 = vstv %s683_s6 }
  0x59   :  { %v275_v1 = vadd.f32 %v274_v50, %v273_v57  ;;  %v288_v3 = vadd.f32 %v287_v52, %v285_v58  ;;  %v300_v4 = vadd.f32 %v299_v60, %v297_v59  ;;  %v305_v7 = vmul.f32 %v304_v63, %v228_v17 }
  0x5a   :  { %v308_v11 = vmul.f32 %v307_v0, %v242_v29  ;;  %v310_v62 = vstv %s416_s7 }
  0x5b   :  { %277 = vst [vmem:[#allocation11 + $0x8] sm:$0xff] %v275_v1  ;;  %v291_v8 = vadd.f32 %v290_v54, %v288_v3  ;;  %v303_v9 = vadd.f32 %v302_v5, %v300_v4 }
  0x5d   :  { %v293_v12 = vadd.f32 %v292_v6, %v291_v8  ;;  %v306_v13 = vadd.f32 %v305_v7, %v303_v9 }
  0x5f   :  { %295 = vst [vmem:[#allocation11 + $0x10] sm:$0xff] %v293_v12  ;;  %v309_v2 = vadd.f32 %v308_v11, %v306_v13 }
  0x61   :  { %v311_v14 = vadd.f32 %v310_v62, %v309_v2 }
  0x63   :  { %313 = vst [vmem:[#allocation11 + $0x18] sm:$0xff] %v311_v14 }
  0x64   :  { %318 = vsyncadd [#allocation3], 448  ;;  %s488_s8 = smov [#allocation11]   ;;  %s489_s10 = smov 128  }
  0x65   :  { %s335_s9 = sshll.u32 %s488_s8, 4  ;;  %342 = sst [smem:[#allocation13]] %s489_s10  ;;  %s336_s9 = int_to_ptr.vmem [resolvable:$true] %s335_s9 }
  0x66   :  { %s490_s11 = smov 16   ;;  %s491_s12 = smov 1  }
  0x67   :  { %344 = sst [smem:[#allocation13 + $0x1]] %s490_s11  ;;  %s492_s13 = smov [#allocation3]  }
  0x68   :  { %346 = sst [smem:[#allocation13 + $0x2]] %s491_s12  ;;  %s493_s4 = smov [#allocation12]  }
  0x69   :  { %348 = sst [smem:[#allocation13 + $0x3]] %s490_s11  ;;  %s494_s14 = smov 0  }
  0x6a   :  { %350 = sst [smem:[#allocation13 + $0x4]] %s490_s11 }
  0x6b   :  { %352 = sst [smem:[#allocation13 + $0x5]] %s491_s12 }
  0x6c   :  { %354 = dma.general %s336_s9, 64, %s711_s5, %s492_s13, %s493_s4, [#allocation13], %s494_s14, 0  }
  0x6d   :  { %482 = dma.done.wait [#allocation3], 512  }
  0x6e   :  { %483 = vsyncadd [#allocation3], 4294966784 }
  0x6f   :  { %358 = vsyncpa [#allocation3], 1 }
  0x70   :  { %359 = vsyncpa [#allocation4], 1 }
  0x71   :  { %360 = vsyncpa [#allocation6], 1 }
  0x72   :  { %361 = vsyncpa [#allocation9], 1 }

</bundles_post_ra>
